<compile_context>
chip_gen: v6e
topology: v6e:2x2x1
jax: 0.10.0
libtpu: 0.0.40
codegen_flags: <defaults>
</compile_context>

<pallas_src>
import math

import jax
import jax.numpy as jnp
from jax.experimental import pallas as pl
from jax.experimental.pallas import tpu as pltpu


# ---------------------------------------------------------------------------
# Generation-aware sizing helpers
# ---------------------------------------------------------------------------
def _vmem_capacity_bytes():
    """Physical VMEM of the current TPU generation (fallback: v7x's 64 MiB)."""
    try:
        cap = getattr(pltpu.get_tpu_info(), "vmem_capacity_bytes", None)
        if cap:
            return int(cap)
    except Exception:
        pass
    return 64 * 1024 * 1024


def _vmem_limit_bytes():
    # Never request the full physical VMEM: leave headroom for compiler
    # scratch and the double-buffered DMA windows (~75% of capacity).
    return int(_vmem_capacity_bytes() * 0.75)


def _pick_gemm_tile(dim, target, align):
    """Block size for one GEMM dim.

    Full-dim block if the dim is small; otherwise the largest `align`-multiple
    divisor of `dim` that is <= target (so no padding / post-slice HBM pass is
    needed); otherwise `target` and the caller pads (rare, ragged shapes)."""
    if dim <= target:
        return dim
    t = (target // align) * align
    while t >= align:
        if dim % t == 0:
            return t
        t -= align
    return target


def _pick_q_tile(S, target=256):
    """q-tile length: full S if small, else a multiple-of-8 divisor of S."""
    if S <= target:
        return S
    t = (target // 8) * 8
    while t >= 8:
        if S % t == 0:
            return t
        t -= 8
    return S


def _pick_head_group(BH, S, tq, d_k, attn_bytes, budget_bytes, emit_attn):
    """Largest divisor G of BH whose double-buffered attention blocks fit."""
    per_bh = (tq * d_k + 2 * S * d_k + tq * d_k) * 4      # q, k, v, o (f32)
    if emit_attn:
        per_bh += tq * S * attn_bytes                      # attn tile
    per_bh *= 2                                            # double-buffered
    g_max = max(1, budget_bytes // max(per_bh, 1))
    g_max = int(min(g_max, BH, 8))
    for g in range(g_max, 0, -1):
        if BH % g == 0:
            return g
    return 1


# ---------------------------------------------------------------------------
# Kernels
# ---------------------------------------------------------------------------
def make_linear_kernel(mxu_dtype):
    def linear_kernel(x_ref, w_ref, b_ref, o_ref, acc_ref):
        # x: (tm, tk), w: (tk, tn), b: (1, tn), o: (tm, tn), acc: (tm, tn) f32.
        @pl.when(pl.program_id(2) == 0)
        def _():
            acc_ref[...] = jnp.zeros_like(acc_ref)

        # bf16 MXU operands, f32 accumulation.
        acc_ref[...] += jnp.dot(x_ref[...].astype(mxu_dtype),
                                w_ref[...].astype(mxu_dtype),
                                preferred_element_type=jnp.float32)

        @pl.when(pl.program_id(2) == pl.num_programs(2) - 1)
        def _():
            o_ref[...] = (acc_ref[...] + b_ref[...]).astype(o_ref.dtype)

    return linear_kernel


def make_attention_kernel(d_k, emit_attn, mxu_dtype):
    inv_sqrt_dk = 1.0 / math.sqrt(d_k)

    def attention_kernel(q_ref, k_ref, v_ref, o_ref, *attn_refs):
        # q: (G, tq, d_k), k/v: (G, S, d_k), o: (G, tq, d_k), attn: (G, tq, S).
        q = q_ref[...].astype(mxu_dtype)
        k = k_ref[...].astype(mxu_dtype)
        # Batched QK^T contracting the last axes: no explicit K^T copy.
        scores = jnp.einsum("gqd,gkd->gqk", q, k,
                            preferred_element_type=jnp.float32) * inv_sqrt_dk
        m = jnp.max(scores, axis=-1, keepdims=True)
        e = jnp.exp(scores - m)
        denom = jnp.sum(e, axis=-1, keepdims=True)
        # Exact normalization so emitted rows sum to 1 (matches torch.softmax).
        attn = e / denom
        if emit_attn:
            attn_refs[0][...] = attn.astype(attn_refs[0].dtype)
        o_ref[...] = jnp.einsum("gqk,gkd->gqd",
                                attn.astype(mxu_dtype),
                                v_ref[...].astype(mxu_dtype),
                                preferred_element_type=jnp.float32
                                ).astype(o_ref.dtype)

    return attention_kernel


# ---------------------------------------------------------------------------
# Wrappers
# ---------------------------------------------------------------------------
def pallas_linear(x, w, b, *, tm=512, tn=512, tk=1024, mxu_dtype=jnp.bfloat16):
    """x: (B, S, D_in), w: (D_in, D_out), b: (D_out,) -> (B, S, D_out)."""
    B, S, D_in = x.shape
    D_out = w.shape[1]
    M, K, N = B * S, D_in, D_out

    tm = _pick_gemm_tile(M, tm, 8)
    tn = _pick_gemm_tile(N, tn, 128)
    tk = _pick_gemm_tile(K, tk, 128)

    Mp = pl.cdiv(M, tm) * tm
    Kp = pl.cdiv(K, tk) * tk
    Np = pl.cdiv(N, tn) * tn

    xf = x.reshape(M, K)
    if (Mp, Kp) != (M, K):                       # rare: ragged fallback only
        xf = jnp.pad(xf, ((0, Mp - M), (0, Kp - K)))
    wf = w if (Kp, Np) == (K, N) else jnp.pad(w, ((0, Kp - K), (0, Np - N)))
    bf = (b if Np == N else jnp.pad(b, (0, Np - N))).reshape(1, Np)

    out = pl.pallas_call(
        make_linear_kernel(mxu_dtype),
        out_shape=jax.ShapeDtypeStruct((Mp, Np), x.dtype),
        grid=(Mp // tm, Np // tn, Kp // tk),
        in_specs=[
            pl.BlockSpec((tm, tk), lambda i, j, k: (i, k)),
            pl.BlockSpec((tk, tn), lambda i, j, k: (k, j)),
            pl.BlockSpec((1, tn), lambda i, j, k: (0, j)),
        ],
        out_specs=pl.BlockSpec((tm, tn), lambda i, j, k: (i, j)),
        scratch_shapes=[pltpu.VMEM((tm, tn), jnp.float32)],
        compiler_params=pltpu.CompilerParams(
            dimension_semantics=("parallel", "parallel", "arbitrary"),
            vmem_limit_bytes=_vmem_limit_bytes(),
        ),
    )(xf, wf, bf)

    if (Mp, Np) != (M, N):
        out = out[:M, :N]
    return out.reshape(B, S, D_out)


def pallas_mha_attention(Qp, Kp, Vp, num_heads, *, return_attn=True,
                         attn_dtype=jnp.float32, mxu_dtype=jnp.bfloat16):
    """Qp/Kp/Vp: projected activations (B, S, d_model).

    Returns (out (B, S, d_model), attn (B, H, S, S) or None)."""
    B, S, d_model = Qp.shape
    H = num_heads
    d_k = d_model // H
    BH = B * H

    tq = _pick_q_tile(S)
    nq = S // tq

    vmem_limit = _vmem_limit_bytes()
    block_budget = int(vmem_limit * 0.7)
    attn_bytes = jnp.dtype(attn_dtype).itemsize

    kernel = make_attention_kernel(d_k, return_attn, mxu_dtype)

    if d_k % 128 == 0:
        # Lane-dense path: no head split/merge transposes. Q/K/V are read
        # straight from the (B, S, d_model) projections by picking the head's
        # column block in the index_map, and the output is written directly
        # into (B, S, d_model) with a 128-aligned (lane-dense) store.
        in_specs = [
            pl.BlockSpec((1, tq, d_k), lambda b, h, qi: (b, qi, h)),
            pl.BlockSpec((1, S, d_k), lambda b, h, qi: (b, 0, h)),
            pl.BlockSpec((1, S, d_k), lambda b, h, qi: (b, 0, h)),
        ]
        out_shape = [jax.ShapeDtypeStruct((B, S, d_model), Qp.dtype)]
        out_specs = [pl.BlockSpec((1, tq, d_k), lambda b, h, qi: (b, qi, h))]
        if return_attn:
            out_shape.append(jax.ShapeDtypeStruct((BH, S, S), attn_dtype))
            out_specs.append(
                pl.BlockSpec((1, tq, S), lambda b, h, qi: (b * H + h, qi, 0)))

        results = pl.pallas_call(
            kernel,
            out_shape=tuple(out_shape),
            grid=(B, H, nq),
            in_specs=in_specs,
            out_specs=tuple(out_specs),
            compiler_params=pltpu.CompilerParams(
                dimension_semantics=("parallel", "parallel", "parallel"),
                vmem_limit_bytes=vmem_limit,
            ),
        )(Qp, Kp, Vp)
        out = results[0]                                   # already (B,S,d_model)
    else:
        # Fallback path (d_k not 128-aligned, e.g. toy sizes): split heads via
        # transpose and batch G (batch, head) pairs per grid step. G is sized
        # from the VMEM budget of this generation.
        G = _pick_head_group(BH, S, tq, d_k, attn_bytes, block_budget,
                             return_attn)
        qf = Qp.reshape(B, S, H, d_k).transpose(0, 2, 1, 3).reshape(BH, S, d_k)
        kf = Kp.reshape(B, S, H, d_k).transpose(0, 2, 1, 3).reshape(BH, S, d_k)
        vf = Vp.reshape(B, S, H, d_k).transpose(0, 2, 1, 3).reshape(BH, S, d_k)

        in_specs = [
            pl.BlockSpec((G, tq, d_k), lambda i, qi: (i, qi, 0)),
            pl.BlockSpec((G, S, d_k), lambda i, qi: (i, 0, 0)),
            pl.BlockSpec((G, S, d_k), lambda i, qi: (i, 0, 0)),
        ]
        out_shape = [jax.ShapeDtypeStruct((BH, S, d_k), Qp.dtype)]
        out_specs = [pl.BlockSpec((G, tq, d_k), lambda i, qi: (i, qi, 0))]
        if return_attn:
            out_shape.append(jax.ShapeDtypeStruct((BH, S, S), attn_dtype))
            out_specs.append(pl.BlockSpec((G, tq, S), lambda i, qi: (i, qi, 0)))

        results = pl.pallas_call(
            kernel,
            out_shape=tuple(out_shape),
            grid=(BH // G, nq),
            in_specs=in_specs,
            out_specs=tuple(out_specs),
            compiler_params=pltpu.CompilerParams(
                dimension_semantics=("parallel", "parallel"),
                vmem_limit_bytes=vmem_limit,
            ),
        )(qf, kf, vf)
        out = (results[0].reshape(B, H, S, d_k)
               .transpose(0, 2, 1, 3).reshape(B, S, d_model))

    attn = results[1].reshape(B, H, S, S) if return_attn else None
    return out, attn


def multi_head_attention(Q, K, V, params, num_heads, *, return_attn=True,
                         attn_dtype=jnp.float32, mxu_dtype=jnp.bfloat16,
                         self_attention=None):
    """Q/K/V: (B, S, d_model). Returns (output (B,S,d_model), attn (B,H,S,S))."""
    B, S, d_model = Q.shape

    if self_attention is None:
        # NOTE: object-identity dispatch only; pass self_attention=True
        # explicitly under jit if the fused path is required.
        self_attention = (Q is K) and (K is V)

    if self_attention:
        # Self-attention: one fused QKV GEMM (weights pre-concatenated at
        # init) so the activations are read from HBM once.
        if "Wqkv" in params:
            w_qkv, b_qkv = params["Wqkv"], params["bqkv"]
        else:
            w_qkv = jnp.concatenate([params["Wq"], params["Wk"], params["Wv"]], axis=1)
            b_qkv = jnp.concatenate([params["bq"], params["bk"], params["bv"]])
        qkv = pallas_linear(Q, w_qkv, b_qkv, mxu_dtype=mxu_dtype)   # (B,S,3*d_model)
        Qp, Kp, Vp = jnp.split(qkv, 3, axis=-1)
    else:
        Qp = pallas_linear(Q, params["Wq"], params["bq"], mxu_dtype=mxu_dtype)
        Kp = pallas_linear(K, params["Wk"], params["bk"], mxu_dtype=mxu_dtype)
        Vp = pallas_linear(V, params["Wv"], params["bv"], mxu_dtype=mxu_dtype)

    out, attn = pallas_mha_attention(Qp, Kp, Vp, num_heads,
                                     return_attn=return_attn,
                                     attn_dtype=attn_dtype,
                                     mxu_dtype=mxu_dtype)

    out = pallas_linear(out, params["Wo"], params["bo"], mxu_dtype=mxu_dtype)
    return out, attn


# ---------------------------------------------------------------------------
# Deterministic parameter init (synthetic; mirrors nn.Linear shapes)
# ---------------------------------------------------------------------------
def init_params(key, d_model):
    bound = 1.0 / math.sqrt(d_model)
    keys = jax.random.split(key, 8)
    # Weights stored as (d_in, d_out) so the kernel computes x @ W + b.
    p = {
        "Wq": jax.random.uniform(keys[0], (d_model, d_model), jnp.float32, -bound, bound),
        "bq": jax.random.uniform(keys[1], (d_model,), jnp.float32, -bound, bound),
        "Wk": jax.random.uniform(keys[2], (d_model, d_model), jnp.float32, -bound, bound),
        "bk": jax.random.uniform(keys[3], (d_model,), jnp.float32, -bound, bound),
        "Wv": jax.random.uniform(keys[4], (d_model, d_model), jnp.float32, -bound, bound),
        "bv": jax.random.uniform(keys[5], (d_model,), jnp.float32, -bound, bound),
        "Wo": jax.random.uniform(keys[6], (d_model, d_model), jnp.float32, -bound, bound),
        "bo": jax.random.uniform(keys[7], (d_model,), jnp.float32, -bound, bound),
    }
    # Pre-concatenate the fused QKV weights once (no per-call concat in HBM).
    p["Wqkv"] = jnp.concatenate([p["Wq"], p["Wk"], p["Wv"]], axis=1)
    p["bqkv"] = jnp.concatenate([p["bq"], p["bk"], p["bv"]])
    return p


if __name__ == "__main__":
    batch, seq, d_model, num_heads = 2, 8, 32, 4

    key = jax.random.PRNGKey(0)
    k_params, kx, kq, kk, kv = jax.random.split(key, 5)

    params = init_params(k_params, d_model)

    # Pure-JAX f32 reference of the same math.
    def ref_mha(Qi, Ki, Vi):
        d_k = d_model // num_heads
        def proj(x, w, b):
            return (x @ w + b).reshape(batch, seq, num_heads, d_k).transpose(0, 2, 1, 3)
        q = proj(Qi, params["Wq"], params["bq"])
        k = proj(Ki, params["Wk"], params["bk"])
        v = proj(Vi, params["Wv"], params["bv"])
        s = jnp.einsum("bhqd,bhkd->bhqk", q, k) / math.sqrt(d_k)
        a = jax.nn.softmax(s, axis=-1)
        o = jnp.einsum("bhqk,bhkd->bhqd", a, v).transpose(0, 2, 1, 3).reshape(batch, seq, d_model)
        return o @ params["Wo"] + params["bo"], a

    # Tolerance reflects bf16 MXU operands (f32 accumulation) vs. the pure
    # f32 reference.
    TOL = dict(atol=2e-2, rtol=2e-2)

    # Case 1: self-attention (same tensor for Q/K/V -> fused QKV projection).
    X = jax.random.normal(kx, (batch, seq, d_model), jnp.float32)
    out_sa, attn_sa = multi_head_attention(X, X, X, params, num_heads)
    jax.block_until_ready((out_sa, attn_sa))
    out_sa_ref, attn_sa_ref = ref_mha(X, X, X)
    assert out_sa.shape == (batch, seq, d_model)
    assert attn_sa.shape == (batch, num_heads, seq, seq)
    assert jnp.allclose(out_sa, out_sa_ref, **TOL)
    assert jnp.allclose(attn_sa, attn_sa_ref, **TOL)

    # Case 2: distinct Q/K/V (separate projections path).
    Q = jax.random.normal(kq, (batch, seq, d_model), jnp.float32)
    K = jax.random.normal(kk, (batch, seq, d_model), jnp.float32)
    V = jax.random.normal(kv, (batch, seq, d_model), jnp.float32)
    out_ca, attn_ca = multi_head_attention(Q, K, V, params, num_heads)
    jax.block_until_ready((out_ca, attn_ca))
    out_ca_ref, attn_ca_ref = ref_mha(Q, K, V)
    assert jnp.allclose(out_ca, out_ca_ref, **TOL)
    assert jnp.allclose(attn_ca, attn_ca_ref, **TOL)

    print("KERNEL_OK")
</pallas_src>

<mosaic_0001>
module attributes {stable_mosaic.version = 11 : i64} {
  func.func @linear_kernel(%arg0: i32, %arg1: i32, %arg2: i32, %arg3: memref<16x32xf32, #tpu.memory_space<vmem>>, %arg4: memref<32x96xf32, #tpu.memory_space<vmem>>, %arg5: memref<1x96xf32, #tpu.memory_space<vmem>>, %arg6: memref<16x96xf32, #tpu.memory_space<vmem>>, %arg7: memref<16x96xf32, #tpu.memory_space<vmem>>) attributes {dimension_semantics = [#tpu.dimension_semantics<parallel>, #tpu.dimension_semantics<parallel>, #tpu.dimension_semantics<arbitrary>], iteration_bounds = array<i64: 1, 1, 1>, scalar_prefetch = 0 : i64, scratch_operands = 1 : i64, tpu.core_type = #tpu.core_type<tc>, window_params = [{transform_indices = @transform_0, window_bounds = array<i64: 16, 32>}, {transform_indices = @transform_1, window_bounds = array<i64: 32, 96>}, {transform_indices = @transform_2, window_bounds = array<i64: 1, 96>}, {transform_indices = @transform_3, window_bounds = array<i64: 16, 96>}]} {
    %c0_i32 = arith.constant 0 : i32
    %0 = arith.cmpi eq, %arg2, %c0_i32 : i32
    %1 = arith.extui %0 : i1 to i32
    %c0_i32_0 = arith.constant 0 : i32
    %2 = arith.cmpi ne, %1, %c0_i32_0 : i32
    scf.if %2 {
      %cst_10 = arith.constant 0.000000e+00 : f32
      %14 = vector.broadcast %cst_10 : f32 to vector<16x96xf32>
      %c0_11 = arith.constant 0 : index
      %c0_12 = arith.constant 0 : index
      %15 = vector.load %arg7[%c0_11, %c0_12] : memref<16x96xf32, #tpu.memory_space<vmem>>, vector<16x96xf32>
      tpu.vector_store %arg7[%c0_11, %c0_12], %14 {strides = array<i32>} : memref<16x96xf32, #tpu.memory_space<vmem>>, vector<16x96xf32>,
    } else {
    }
    %c0 = arith.constant 0 : index
    %c0_1 = arith.constant 0 : index
    %3 = vector.load %arg7[%c0, %c0_1] : memref<16x96xf32, #tpu.memory_space<vmem>>, vector<16x96xf32>
    %c0_2 = arith.constant 0 : index
    %c0_3 = arith.constant 0 : index
    %4 = vector.load %arg3[%c0_2, %c0_3] : memref<16x32xf32, #tpu.memory_space<vmem>>, vector<16x32xf32>
    %5 = arith.truncf %4 : vector<16x32xf32> to vector<16x32xbf16>
    %c0_4 = arith.constant 0 : index
    %c0_5 = arith.constant 0 : index
    %6 = vector.load %arg4[%c0_4, %c0_5] : memref<32x96xf32, #tpu.memory_space<vmem>>, vector<32x96xf32>
    %7 = arith.truncf %6 : vector<32x96xf32> to vector<32x96xbf16>
    %cst = arith.constant dense<0.000000e+00> : vector<16x96xf32>
    %8 = tpu.matmul %5, %7, %cst {dimension_numbers = #tpu.dot_dimension_numbers<[1], [0], [0], [1], [0, 0, 1, 1], [], []>} : vector<16x32xbf16>, vector<32x96xbf16>, vector<16x96xf32> -> vector<16x96xf32>
    %9 = arith.addf %3, %8 : vector<16x96xf32>
    %c0_6 = arith.constant 0 : index
    %c0_7 = arith.constant 0 : index
    %10 = vector.load %arg7[%c0_6, %c0_7] : memref<16x96xf32, #tpu.memory_space<vmem>>, vector<16x96xf32>
    tpu.vector_store %arg7[%c0_6, %c0_7], %9 {strides = array<i32>} : memref<16x96xf32, #tpu.memory_space<vmem>>, vector<16x96xf32>,
    %c0_i32_8 = arith.constant 0 : i32
    %11 = arith.cmpi eq, %arg2, %c0_i32_8 : i32
    %12 = arith.extui %11 : i1 to i32
    %c0_i32_9 = arith.constant 0 : i32
    %13 = arith.cmpi ne, %12, %c0_i32_9 : i32
    scf.if %13 {
      %c0_10 = arith.constant 0 : index
      %c0_11 = arith.constant 0 : index
      %14 = vector.load %arg7[%c0_10, %c0_11] : memref<16x96xf32, #tpu.memory_space<vmem>>, vector<16x96xf32>
      %c0_12 = arith.constant 0 : index
      %c0_13 = arith.constant 0 : index
      %15 = vector.load %arg5[%c0_12, %c0_13] : memref<1x96xf32, #tpu.memory_space<vmem>>, vector<1x96xf32>
      %16 = vector.broadcast %15 : vector<1x96xf32> to vector<16x96xf32>
      %17 = arith.addf %14, %16 : vector<16x96xf32>
      %c0_14 = arith.constant 0 : index
      %c0_15 = arith.constant 0 : index
      %18 = vector.load %arg6[%c0_14, %c0_15] : memref<16x96xf32, #tpu.memory_space<vmem>>, vector<16x96xf32>
      tpu.vector_store %arg6[%c0_14, %c0_15], %17 {strides = array<i32>} : memref<16x96xf32, #tpu.memory_space<vmem>>, vector<16x96xf32>,
    } else {
    }
    return
  }
  func.func @transform_0(%arg0: i32, %arg1: i32, %arg2: i32) -> (i32, i32) {
    %c0_i32 = arith.constant 0 : i32
    return %arg0, %arg2 : i32, i32
  }
  func.func @transform_1(%arg0: i32, %arg1: i32, %arg2: i32) -> (i32, i32) {
    %c0_i32 = arith.constant 0 : i32
    return %arg2, %arg1 : i32, i32
  }
  func.func @transform_2(%arg0: i32, %arg1: i32, %arg2: i32) -> (i32, i32) {
    %c0_i32 = arith.constant 0 : i32
    %c0_i32_0 = arith.constant 0 : i32
    return %c0_i32, %arg1 : i32, i32
  }
  func.func @transform_3(%arg0: i32, %arg1: i32, %arg2: i32) -> (i32, i32) {
    %c0_i32 = arith.constant 0 : i32
    return %arg0, %arg1 : i32, i32
  }
}

</mosaic_0001>

<bundles_post_ra>
// kernel: tpu_custom_call.1
= control target key start
LH: loop header
LB: loop body
LE: loop exit
PB: predicated region body
PF: predicated region fallthrough
CT: control target
= control target key end

     0   :  { %8 = vsyncpa [#allocation4], 0  ;;  %s286_s0 = inlined_call_operand.hbm [shape: f32[16,32], index: 0, kind: input, shape index: {}]   ;;  %s287_s1 = inlined_call_operand.hbm [shape: f32[32,96], index: 1, kind: input, shape index: {}]   ;;  %s288_s2 = inlined_call_operand.vmem [shape: f32[1,96], index: 2, kind: input, shape index: {}]   ;;  %s289_s3 = inlined_call_operand.hbm [shape: f32[16,96], index: 3, kind: output, shape index: {}]  }
   0x1   :  { %9 = vsyncpa [#allocation7], 0 }
   0x2   :  { %10 = vsyncpa [#allocation5], 0  ;;  %s232_s12 = smov [#allocation3]  }
   0x3   :  { %s16_s13 = sshll.u32 %s232_s12, 4  ;;  %s17_s13 = int_to_ptr.vmem [resolvable:$true] %s16_s13 }
   0x4   :  { %s174_s14 = scalar_lea.vmem %s17_s13, 256  ;;  %p179_p1 = scmp.lt.s32.totalorder %s17_s13, %s17_s13 }
   0x5   :  { %p175_p0 = scmp.ne.s32.totalorder %s17_s13, %s174_s14  ;;  %p180_p2 = scmp.lt.s32.totalorder %s174_s14, %s174_s14 }
   0x7   :  { %p181_p3 = por %p180_p2, %p179_p1 }
   0x9   :  { %p182_p4 = pnand %p181_p3, %p175_p0 }
   0xb   :  { %185 = shalt.err (!%p182_p4)
}
   0xc   :  { %s233_s15 = smov 128   ;;  %s234_s16 = smov 8  }
   0xd   :  { %22 = dma.hbm_to_vmem [thread:$0]  %s286_s0, 256, %s17_s13, [#allocation4], %s233_s15, %s233_s15, %s234_s16  }
   0xe   :  { %s235_s19 = smov [#allocation6]  }
   0xf   :  { %s28_s20 = sshll.u32 %s235_s19, 4  ;;  %s29_s20 = int_to_ptr.vmem [resolvable:$true] %s28_s20 }
  0x10   :  { %s194_s21 = scalar_lea.vmem %s29_s20, 512  ;;  %p199_p6 = scmp.lt.s32.totalorder %s29_s20, %s29_s20 }
  0x11   :  { %p195_p5 = scmp.ne.s32.totalorder %s29_s20, %s194_s21  ;;  %p200_p7 = scmp.lt.s32.totalorder %s194_s21, %s194_s21 }
  0x13   :  { %p201_p8 = por %p200_p7, %p199_p6 }
  0x15   :  { %p202_p9 = pnand %p201_p8, %p195_p5 }
  0x17   :  { %205 = shalt.err (!%p202_p9)
}
  0x18   :  { %34 = dma.hbm_to_vmem [thread:$0]  %s287_s1, 512, %s29_s20, [#allocation7], %s233_s15, %s233_s15, %s234_s16  }
  0x19   :  { %226 = dma.done.wait [#allocation4], 256  }
  0x1a   :  { %227 = vsyncadd [#allocation4], 4294967040 }
  0x1b   :  { %228 = dma.done.wait [#allocation7], 512  }
  0x1c   :  { %229 = vsyncadd [#allocation7], 4294966784  ;;  %vm48_vm0 = vcmask 785408   ;;  %v236_v0 = vmov 0.0   ;;  %vm237_vm1 = vmmov 0   ;;  %v58_v1 = vld [vmem:[#allocation6 + $0x10] sm:$0xff] }
  0x1d   :  { %49 = vst.msk [vmem:[#allocation2] sm:$0xff] %vm48_vm0, %v236_v0  ;;  %50 = vst.msk [vmem:[#allocation2 + $0x8] sm:$0xff] %vm48_vm0, %v236_v0  ;;  %151 = vmatprep.subr.bf16.mxu0 %v236_v0  ;;  %155 = vmatprep.mubr.msk.bf16.mxu0 %vm237_vm1, %v236_v0  ;;  %v59_v2 = vld [vmem:[#allocation6 + $0x18] sm:$0xff]  ;;  %v56_v3 = vld [vmem:[#allocation6] sm:$0xff]  ;;  %vm62_vm2 = vcmask 261120   ;;  %s238_s24 = smov [#allocation8]  }
  0x1e   :  { %v61_v4 = vpack.c.bf16 %v59_v2, %v58_v1  ;;  %v57_v5 = vld [vmem:[#allocation6 + $0x8] sm:$0xff]  ;;  %v53_v7 = vld [vmem:[#allocation3] sm:$0xff]  ;;  %v54_v8 = vld [vmem:[#allocation3 + $0x8] sm:$0xff]  ;;  %s133_s25 = sshll.u32 %s238_s24, 4  ;;  %s134_s25 = int_to_ptr.vmem [resolvable:$true] %s133_s25 }
  0x1f   :  { %v60_v6 = vpack.c.bf16 %v57_v5, %v56_v3  ;;  %v55_v9 = vpack.c.bf16 %v54_v8, %v53_v7  ;;  %v147_v18 = vld [vmem:[%s288_s2] ss:$0 sm:$0xff]  ;;  %s206_s26 = scalar_lea.vmem %s134_s25, 256  ;;  %p211_p11 = scmp.lt.s32.totalorder %s134_s25, %s134_s25 }
  0x20   :  { %152 = vmatpush3.bf16.msra.mxu0 %v61_v4  ;;  %p207_p10 = scmp.ne.s32.totalorder %s134_s25, %s206_s26  ;;  %p212_p12 = scmp.lt.s32.totalorder %s206_s26, %s206_s26 }
  0x21   :  { %153 = vmatprep.subr.bf16.mxu0 %v236_v0 }
  0x22   :  { %p213_p13 = por %p212_p12, %p211_p11 }
  0x24   :  { %154 = vmatpush3.bf16.msra.mxu0 %v60_v6  ;;  %v51_v10 = vld [vmem:[#allocation2] sm:$0xff]  ;;  %v52_v14 = vld [vmem:[#allocation2 + $0x8] sm:$0xff]  ;;  %p214_p0 = pnand %p213_p13, %p207_p10 }
  0x27   :  { %156 = vmatmul.mubr.msk.bf16.vlgmr.msra.gmra.mxu0 %vm62_vm2, %v55_v9 }
  0xe7   :  { %v100_v11 = vpop.f32.mrf.mxu0 }
  0xe8   :  { %v107_v12 = vadd.f32 %v100_v11, %v51_v10 }
  0xe9   :  { %v157_v13 = vpop.f32.mrf.mxu0 }
  0xea   :  { %110 = vst.msk [vmem:[#allocation2] sm:$0xff] %vm48_vm0, %v107_v12 }
  0xeb   :  { %v103_v15 = vpop.f32.mrf.mxu0 }
  0xec   :  { %v108_v16 = vadd.f32 %v103_v15, %v52_v14 }
  0xed   :  { %v158_v17 = vpop.f32.mrf.mxu0 }
  0xee   :  { %111 = vst.msk [vmem:[#allocation2 + $0x8] sm:$0xff] %vm48_vm0, %v108_v16 }
  0xf1   :  { %v115_v19 = vld [vmem:[#allocation2] sm:$0xff] }
  0xf2   :  { %v124_v20 = vadd.f32 %v147_v18, %v115_v19 }
  0xf4   :  { %126 = vst.msk [vmem:[#allocation8] sm:$0xff] %vm48_vm0, %v124_v20 }
  0xf5   :  { %v116_v21 = vld [vmem:[#allocation2 + $0x8] sm:$0xff] }
  0xf6   :  { %v125_v22 = vadd.f32 %v147_v18, %v116_v21 }
  0xf8   :  { %127 = vst.msk [vmem:[#allocation8 + $0x8] sm:$0xff] %vm48_vm0, %v125_v22 }
  0xf9   :  { %217 = shalt.err (!%p214_p0)
}
  0xfa   :  { %139 = dma.vmem_to_hbm [thread:$0]  %s134_s25, 256, %s289_s3, [#allocation5], %s233_s15, %s233_s15, %s234_s16  }
  0xfb   :  { %230 = dma.done.wait [#allocation5], 256  }
  0xfc   :  { %231 = vsyncadd [#allocation5], 4294967040 }
  0xfd   :  { %143 = vsyncpa [#allocation4], 1 }
  0xfe   :  { %144 = vsyncpa [#allocation7], 1 }
  0xff   :  { %145 = vsyncpa [#allocation5], 1 }

</bundles_post_ra>
